<compile_context>
chip_gen: v5e
topology: v5e:2x2
jax: 0.10.0
libtpu: 0.0.40
codegen_flags: <defaults>
</compile_context>

<pallas_src>
import math

import jax
import jax.numpy as jnp
from jax.experimental import pallas as pl
from jax.experimental.pallas import tpu as pltpu

D_MODEL = 64
D_FF = 32          # int(d_model / 2)
EPS = 1e-6
INV_SQRT_D = 1.0 / math.sqrt(D_MODEL)


def _round_up(x, m):
    return (x + m - 1) // m * m


def _norm(x, alpha, bias):
    # alpha * (x - mean) / (std_unbiased + eps) + bias   (reduction over last axis)
    mean = jnp.mean(x, axis=-1, keepdims=True)
    xc = x - mean
    var = jnp.sum(xc * xc, axis=-1, keepdims=True) * (1.0 / (D_MODEL - 1))
    return alpha * xc / (jnp.sqrt(var) + EPS) + bias


def transform_kernel(q_ref, k_ref, v_ref, w_ref, p_ref, out_ref):
    q = q_ref[...]              # (TB, D)
    k = k_ref[...]              # (TB, T, D)
    v = v_ref[...]              # (TB, T, D)

    # ---- attention on the VPU (broadcast-mul + reduce); no tiny M=1 matmuls ----
    # scores[b, t] = sum_d q[b, d] * k[b, t, d] / sqrt(d_model)
    s = jnp.sum(q[:, None, :] * k, axis=-1) * INV_SQRT_D        # (TB, T)
    s = s - jnp.max(s, axis=-1, keepdims=True)
    e = jnp.exp(s)
    p = e / jnp.sum(e, axis=-1, keepdims=True)                   # softmax over T
    a = jnp.sum(p[:, :, None] * v, axis=1)                       # (TB, D)
    # TODO(synk): dropout inside attention / dropout_2 are identity in eval mode.

    # ---- packed parameters (static lane slices of the two resident slabs) ----
    w1 = w_ref[:, 0:D_MODEL]               # (D, D) = [w1^T | 0]
    w2 = w_ref[:, D_MODEL:2 * D_MODEL]     # (D, D) = [w2^T ; 0]
    b1 = p_ref[0:1, :]                     # (1, D)  (zeros beyond D_FF)
    b2 = p_ref[1:2, :]
    a1 = p_ref[2:3, :]
    be1 = p_ref[3:4, :]
    a2 = p_ref[4:5, :]
    be2 = p_ref[5:6, :]

    # ---- residual + Norm 1 ----
    q_ = _norm(a + q, a1, be1)             # (TB, D)

    # ---- FeedForward on the MXU: relu(q_ @ W1 + b1) @ W2 + b2 (zero-padded, exact) ----
    h = jnp.dot(q_, w1, preferred_element_type=jnp.float32) + b1
    h = jnp.maximum(h, 0.0)
    ff = jnp.dot(h, w2, preferred_element_type=jnp.float32) + b2

    # ---- residual + Norm 2 ----
    out_ref[...] = _norm(q_ + ff, a2, be2)


def transform_forward(q, k, v, params, *, tb=None):
    B, D = q.shape
    T = k.shape[1]
    assert D == D_MODEL

    if tb is None:
        # Per-row double-buffered f32 VMEM footprint, with 64->128 lane padding
        # of the (tb, T, 64) and (tb, 64) tiles accounted for.
        lane = 128
        per_row = 2 * 4 * (2 * T * lane + 2 * lane)      # 2 bufs * f32 * (k+v, q+out)
        budget = 24 * 1024 * 1024                        # safe on v7x (64 MiB phys VMEM)
        cap = max(8, (budget // per_row) // 8 * 8)
        # Keep >= 2 grid steps when B allows, so v7x megacore splits the batch axis.
        two_steps = max(8, _round_up(pl.cdiv(B, 2), 8))
        tb = int(min(1024, cap, two_steps, _round_up(B, 8)))

    grid = pl.cdiv(B, tb)   # ragged last block: OOB writes are dropped by Pallas

    out = pl.pallas_call(
        transform_kernel,
        out_shape=jax.ShapeDtypeStruct((B, D), jnp.float32),
        grid=(grid,),
        in_specs=[
            pl.BlockSpec((tb, D), lambda i: (i, 0)),                 # q
            pl.BlockSpec((tb, T, D), lambda i: (i, 0, 0)),           # k
            pl.BlockSpec((tb, T, D), lambda i: (i, 0, 0)),           # v
            pl.BlockSpec((D_MODEL, 2 * D_MODEL), lambda i: (0, 0)),  # weight slab (64,128)
            pl.BlockSpec((8, D_MODEL), lambda i: (0, 0)),            # vector slab (8,64)
        ],
        out_specs=pl.BlockSpec((tb, D), lambda i: (i, 0)),
        compiler_params=pltpu.CompilerParams(
            dimension_semantics=("parallel",),            # 2x on v7x megacore
            vmem_limit_bytes=48 * 1024 * 1024,            # > v5e's 16 MiB scoped default
        ),
    )(q, k, v, params["w_slab"], params["p_slab"])
    return out


def init_params(key):
    k1, k2, k3, k4 = jax.random.split(key, 4)
    # nn.init.normal(weight, std=0.001); biases keep nn.Linear default U(+-1/sqrt(fan_in))
    w1 = 0.001 * jax.random.normal(k1, (D_FF, D_MODEL), jnp.float32)   # linear_1.weight
    b1 = jax.random.uniform(k2, (D_FF,), jnp.float32,
                            -1.0 / math.sqrt(D_MODEL), 1.0 / math.sqrt(D_MODEL))
    w2 = 0.001 * jax.random.normal(k3, (D_MODEL, D_FF), jnp.float32)   # linear_2.weight
    b2 = jax.random.uniform(k4, (D_MODEL,), jnp.float32,
                            -1.0 / math.sqrt(D_FF), 1.0 / math.sqrt(D_FF))
    alpha1 = jnp.ones((D_MODEL,), jnp.float32)
    beta1 = jnp.zeros((D_MODEL,), jnp.float32)
    alpha2 = jnp.ones((D_MODEL,), jnp.float32)
    beta2 = jnp.zeros((D_MODEL,), jnp.float32)

    # ---- pack weights into one lane-dense (D, 2*D) slab: [w1^T | 0  ||  w2^T ; 0] ----
    w1t = jnp.zeros((D_MODEL, D_MODEL), jnp.float32).at[:, :D_FF].set(w1.T)  # (64, 64)
    w2t = jnp.zeros((D_MODEL, D_MODEL), jnp.float32).at[:D_FF, :].set(w2.T)  # (64, 64)
    w_slab = jnp.concatenate([w1t, w2t], axis=1)                             # (64, 128)

    # ---- pack the six small vectors into one (8, D) slab ----
    b1p = jnp.zeros((D_MODEL,), jnp.float32).at[:D_FF].set(b1)
    zeros = jnp.zeros((D_MODEL,), jnp.float32)
    p_slab = jnp.stack([b1p, b2, alpha1, beta1, alpha2, beta2, zeros, zeros],
                       axis=0)                                               # (8, 64)

    return {"w_slab": w_slab, "p_slab": p_slab}


if __name__ == "__main__":
    key = jax.random.PRNGKey(0)
    kp, kq, kk, kv = jax.random.split(key, 4)

    B, T = 4, 8
    q = jax.random.normal(kq, (B, D_MODEL), jnp.float32)
    k = jax.random.normal(kk, (B, T, D_MODEL), jnp.float32)
    v = jax.random.normal(kv, (B, T, D_MODEL), jnp.float32)

    params = init_params(kp)

    out = transform_forward(q, k, v, params)
    jax.block_until_ready(out)
    assert out.shape == (B, D_MODEL) and out.dtype == jnp.float32
    assert bool(jnp.all(jnp.isfinite(out)))
    print("KERNEL_OK")
</pallas_src>

<mosaic_0001>
module attributes {stable_mosaic.version = 11 : i64} {
  func.func @transform_kernel(%arg0: i32, %arg1: memref<8x64xf32, #tpu.memory_space<vmem>>, %arg2: memref<8x8x64xf32, #tpu.memory_space<vmem>>, %arg3: memref<8x8x64xf32, #tpu.memory_space<vmem>>, %arg4: memref<64x128xf32, #tpu.memory_space<vmem>>, %arg5: memref<8x64xf32, #tpu.memory_space<vmem>>, %arg6: memref<8x64xf32, #tpu.memory_space<vmem>>) attributes {dimension_semantics = [#tpu.dimension_semantics<parallel>], iteration_bounds = array<i64: 1>, scalar_prefetch = 0 : i64, scratch_operands = 0 : i64, tpu.core_type = #tpu.core_type<tc>, window_params = [{transform_indices = @transform_0, window_bounds = array<i64: 8, 64>}, {transform_indices = @transform_1, window_bounds = array<i64: 8, 8, 64>}, {transform_indices = @transform_2, window_bounds = array<i64: 8, 8, 64>}, {pipeline_mode = #tpu.pipeline_mode<synchronous>, transform_indices = @transform_3, window_bounds = array<i64: 64, 128>}, {pipeline_mode = #tpu.pipeline_mode<synchronous>, transform_indices = @transform_4, window_bounds = array<i64: 8, 64>}, {transform_indices = @transform_5, window_bounds = array<i64: 8, 64>}]} {
    %c0 = arith.constant 0 : index
    %c0_0 = arith.constant 0 : index
    %0 = vector.load %arg1[%c0, %c0_0] : memref<8x64xf32, #tpu.memory_space<vmem>>, vector<8x64xf32>
    %c0_1 = arith.constant 0 : index
    %c0_2 = arith.constant 0 : index
    %c0_3 = arith.constant 0 : index
    %1 = vector.load %arg2[%c0_1, %c0_2, %c0_3] : memref<8x8x64xf32, #tpu.memory_space<vmem>>, vector<8x8x64xf32>
    %c0_4 = arith.constant 0 : index
    %c0_5 = arith.constant 0 : index
    %c0_6 = arith.constant 0 : index
    %2 = vector.load %arg3[%c0_4, %c0_5, %c0_6] : memref<8x8x64xf32, #tpu.memory_space<vmem>>, vector<8x8x64xf32>
    %3 = vector.shape_cast %0 : vector<8x64xf32> to vector<8x1x64xf32>
    %4 = vector.broadcast %3 : vector<8x1x64xf32> to vector<8x8x64xf32>
    %5 = arith.mulf %4, %1 : vector<8x8x64xf32>
    %cst = arith.constant dense<0.000000e+00> : vector<8x8xf32>
    %6 = vector.multi_reduction <add>, %5, %cst [2] : vector<8x8x64xf32> to vector<8x8xf32>
    %cst_7 = arith.constant 1.250000e-01 : f32
    %7 = vector.broadcast %cst_7 : f32 to vector<8x8xf32>
    %8 = arith.mulf %6, %7 : vector<8x8xf32>
    %cst_8 = arith.constant dense<0xFF800000> : vector<8xf32>
    %9 = vector.multi_reduction <maximumf>, %8, %cst_8 [1] : vector<8x8xf32> to vector<8xf32>
    %10 = vector.shape_cast %9 : vector<8xf32> to vector<8x1xf32>
    %11 = vector.broadcast %10 : vector<8x1xf32> to vector<8x8xf32>
    %12 = arith.subf %8, %11 : vector<8x8xf32>
    %13 = math.exp %12 : vector<8x8xf32>
    %cst_9 = arith.constant dense<0.000000e+00> : vector<8xf32>
    %14 = vector.multi_reduction <add>, %13, %cst_9 [1] : vector<8x8xf32> to vector<8xf32>
    %15 = vector.shape_cast %14 : vector<8xf32> to vector<8x1xf32>
    %16 = vector.broadcast %15 : vector<8x1xf32> to vector<8x8xf32>
    %17 = arith.divf %13, %16 : vector<8x8xf32>
    %18 = vector.shape_cast %17 : vector<8x8xf32> to vector<8x8x1xf32>
    %19 = vector.broadcast %18 : vector<8x8x1xf32> to vector<8x8x64xf32>
    %20 = arith.mulf %19, %2 : vector<8x8x64xf32>
    %cst_10 = arith.constant dense<0.000000e+00> : vector<8x64xf32>
    %21 = vector.multi_reduction <add>, %20, %cst_10 [1] : vector<8x8x64xf32> to vector<8x64xf32>
    %c0_11 = arith.constant 0 : index
    %c0_12 = arith.constant 0 : index
    %22 = vector.load %arg4[%c0_11, %c0_12] : memref<64x128xf32, #tpu.memory_space<vmem>>, vector<64x64xf32>
    %c0_13 = arith.constant 0 : index
    %c64 = arith.constant 64 : index
    %23 = vector.load %arg4[%c0_13, %c64] : memref<64x128xf32, #tpu.memory_space<vmem>>, vector<64x64xf32>
    %c0_14 = arith.constant 0 : index
    %c0_15 = arith.constant 0 : index
    %24 = vector.load %arg5[%c0_14, %c0_15] : memref<8x64xf32, #tpu.memory_space<vmem>>, vector<1x64xf32>
    %c1 = arith.constant 1 : index
    %c0_16 = arith.constant 0 : index
    %25 = vector.load %arg5[%c1, %c0_16] : memref<8x64xf32, #tpu.memory_space<vmem>>, vector<1x64xf32>
    %c2 = arith.constant 2 : index
    %c0_17 = arith.constant 0 : index
    %26 = vector.load %arg5[%c2, %c0_17] : memref<8x64xf32, #tpu.memory_space<vmem>>, vector<1x64xf32>
    %c3 = arith.constant 3 : index
    %c0_18 = arith.constant 0 : index
    %27 = vector.load %arg5[%c3, %c0_18] : memref<8x64xf32, #tpu.memory_space<vmem>>, vector<1x64xf32>
    %c4 = arith.constant 4 : index
    %c0_19 = arith.constant 0 : index
    %28 = vector.load %arg5[%c4, %c0_19] : memref<8x64xf32, #tpu.memory_space<vmem>>, vector<1x64xf32>
    %c5 = arith.constant 5 : index
    %c0_20 = arith.constant 0 : index
    %29 = vector.load %arg5[%c5, %c0_20] : memref<8x64xf32, #tpu.memory_space<vmem>>, vector<1x64xf32>
    %30 = arith.addf %21, %0 : vector<8x64xf32>
    %cst_21 = arith.constant dense<0.000000e+00> : vector<8xf32>
    %31 = vector.multi_reduction <add>, %30, %cst_21 [1] : vector<8x64xf32> to vector<8xf32>
    %32 = vector.shape_cast %31 : vector<8xf32> to vector<8x1xf32>
    %cst_22 = arith.constant 6.400000e+01 : f32
    %33 = vector.broadcast %cst_22 : f32 to vector<8x1xf32>
    %34 = arith.divf %32, %33 : vector<8x1xf32>
    %35 = vector.broadcast %34 : vector<8x1xf32> to vector<8x64xf32>
    %36 = arith.subf %30, %35 : vector<8x64xf32>
    %37 = arith.mulf %36, %36 : vector<8x64xf32>
    %cst_23 = arith.constant dense<0.000000e+00> : vector<8xf32>
    %38 = vector.multi_reduction <add>, %37, %cst_23 [1] : vector<8x64xf32> to vector<8xf32>
    %39 = vector.shape_cast %38 : vector<8xf32> to vector<8x1xf32>
    %cst_24 = arith.constant 0.0158730168 : f32
    %40 = vector.broadcast %cst_24 : f32 to vector<8x1xf32>
    %41 = arith.mulf %39, %40 : vector<8x1xf32>
    %42 = vector.broadcast %26 : vector<1x64xf32> to vector<8x64xf32>
    %43 = arith.mulf %42, %36 : vector<8x64xf32>
    %44 = math.sqrt %41 : vector<8x1xf32>
    %cst_25 = arith.constant 9.99999997E-7 : f32
    %45 = vector.broadcast %cst_25 : f32 to vector<8x1xf32>
    %46 = arith.addf %44, %45 : vector<8x1xf32>
    %47 = vector.broadcast %46 : vector<8x1xf32> to vector<8x64xf32>
    %48 = arith.divf %43, %47 : vector<8x64xf32>
    %49 = vector.broadcast %27 : vector<1x64xf32> to vector<8x64xf32>
    %50 = arith.addf %48, %49 : vector<8x64xf32>
    %cst_26 = arith.constant dense<0.000000e+00> : vector<8x64xf32>
    %51 = tpu.matmul %50, %22, %cst_26 {dimension_numbers = #tpu.dot_dimension_numbers<[1], [0], [0], [1], [0, 0, 1, 1], [], []>} : vector<8x64xf32>, vector<64x64xf32>, vector<8x64xf32> -> vector<8x64xf32>
    %52 = vector.broadcast %24 : vector<1x64xf32> to vector<8x64xf32>
    %53 = arith.addf %51, %52 : vector<8x64xf32>
    %cst_27 = arith.constant 0.000000e+00 : f32
    %54 = vector.broadcast %cst_27 : f32 to vector<8x64xf32>
    %55 = arith.maximumf %53, %54 : vector<8x64xf32>
    %cst_28 = arith.constant dense<0.000000e+00> : vector<8x64xf32>
    %56 = tpu.matmul %55, %23, %cst_28 {dimension_numbers = #tpu.dot_dimension_numbers<[1], [0], [0], [1], [0, 0, 1, 1], [], []>} : vector<8x64xf32>, vector<64x64xf32>, vector<8x64xf32> -> vector<8x64xf32>
    %57 = vector.broadcast %25 : vector<1x64xf32> to vector<8x64xf32>
    %58 = arith.addf %56, %57 : vector<8x64xf32>
    %59 = arith.addf %50, %58 : vector<8x64xf32>
    %cst_29 = arith.constant dense<0.000000e+00> : vector<8xf32>
    %60 = vector.multi_reduction <add>, %59, %cst_29 [1] : vector<8x64xf32> to vector<8xf32>
    %61 = vector.shape_cast %60 : vector<8xf32> to vector<8x1xf32>
    %cst_30 = arith.constant 6.400000e+01 : f32
    %62 = vector.broadcast %cst_30 : f32 to vector<8x1xf32>
    %63 = arith.divf %61, %62 : vector<8x1xf32>
    %64 = vector.broadcast %63 : vector<8x1xf32> to vector<8x64xf32>
    %65 = arith.subf %59, %64 : vector<8x64xf32>
    %66 = arith.mulf %65, %65 : vector<8x64xf32>
    %cst_31 = arith.constant dense<0.000000e+00> : vector<8xf32>
    %67 = vector.multi_reduction <add>, %66, %cst_31 [1] : vector<8x64xf32> to vector<8xf32>
    %68 = vector.shape_cast %67 : vector<8xf32> to vector<8x1xf32>
    %cst_32 = arith.constant 0.0158730168 : f32
    %69 = vector.broadcast %cst_32 : f32 to vector<8x1xf32>
    %70 = arith.mulf %68, %69 : vector<8x1xf32>
    %71 = vector.broadcast %28 : vector<1x64xf32> to vector<8x64xf32>
    %72 = arith.mulf %71, %65 : vector<8x64xf32>
    %73 = math.sqrt %70 : vector<8x1xf32>
    %cst_33 = arith.constant 9.99999997E-7 : f32
    %74 = vector.broadcast %cst_33 : f32 to vector<8x1xf32>
    %75 = arith.addf %73, %74 : vector<8x1xf32>
    %76 = vector.broadcast %75 : vector<8x1xf32> to vector<8x64xf32>
    %77 = arith.divf %72, %76 : vector<8x64xf32>
    %78 = vector.broadcast %29 : vector<1x64xf32> to vector<8x64xf32>
    %79 = arith.addf %77, %78 : vector<8x64xf32>
    %c0_34 = arith.constant 0 : index
    %c0_35 = arith.constant 0 : index
    %80 = vector.load %arg6[%c0_34, %c0_35] : memref<8x64xf32, #tpu.memory_space<vmem>>, vector<8x64xf32>
    tpu.vector_store %arg6[%c0_34, %c0_35], %79 {strides = array<i32>} : memref<8x64xf32, #tpu.memory_space<vmem>>, vector<8x64xf32>,
    return
  }
  func.func @transform_0(%arg0: i32) -> (i32, i32) {
    %c0_i32 = arith.constant 0 : i32
    %c0_i32_0 = arith.constant 0 : i32
    return %arg0, %c0_i32 : i32, i32
  }
  func.func @transform_1(%arg0: i32) -> (i32, i32, i32) {
    %c0_i32 = arith.constant 0 : i32
    %c0_i32_0 = arith.constant 0 : i32
    %c0_i32_1 = arith.constant 0 : i32
    return %arg0, %c0_i32, %c0_i32_0 : i32, i32, i32
  }
  func.func @transform_2(%arg0: i32) -> (i32, i32, i32) {
    %c0_i32 = arith.constant 0 : i32
    %c0_i32_0 = arith.constant 0 : i32
    %c0_i32_1 = arith.constant 0 : i32
    return %arg0, %c0_i32, %c0_i32_0 : i32, i32, i32
  }
  func.func @transform_3(%arg0: i32) -> (i32, i32) {
    %c0_i32 = arith.constant 0 : i32
    %c0_i32_0 = arith.constant 0 : i32
    %c0_i32_1 = arith.constant 0 : i32
    return %c0_i32, %c0_i32_0 : i32, i32
  }
  func.func @transform_4(%arg0: i32) -> (i32, i32) {
    %c0_i32 = arith.constant 0 : i32
    %c0_i32_0 = arith.constant 0 : i32
    %c0_i32_1 = arith.constant 0 : i32
    return %c0_i32, %c0_i32_0 : i32, i32
  }
  func.func @transform_5(%arg0: i32) -> (i32, i32) {
    %c0_i32 = arith.constant 0 : i32
    %c0_i32_0 = arith.constant 0 : i32
    return %arg0, %c0_i32 : i32, i32
  }
}

</mosaic_0001>

<bundles_post_ra>
// kernel: tpu_custom_call.1
= control target key start
LH: loop header
LB: loop body
LE: loop exit
PB: predicated region body
PF: predicated region fallthrough
CT: control target
= control target key end

     0   :  { %10 = vsyncpa [#allocation3], 0  ;;  %s1441_s0 = inlined_call_operand.hbm [shape: f32[4,64], index: 0, kind: input, shape index: {}]   ;;  %s1442_s1 = inlined_call_operand.hbm [shape: f32[4,8,64], index: 1, kind: input, shape index: {}]   ;;  %s1443_s2 = inlined_call_operand.hbm [shape: f32[4,8,64], index: 2, kind: input, shape index: {}]   ;;  %s1444_s3 = inlined_call_operand.hbm [shape: f32[64,128], index: 3, kind: input, shape index: {}]   ;;  %s1445_s4 = inlined_call_operand.hbm [shape: f32[8,64], index: 4, kind: input, shape index: {}]   ;;  %s1446_s5 = inlined_call_operand.hbm [shape: f32[4,64], index: 5, kind: output, shape index: {}]  }
   0x1   :  { %11 = vsyncpa [#allocation6], 0 }
   0x2   :  { %12 = vsyncpa [#allocation9], 0 }
   0x3   :  { %13 = vsyncpa [#allocation4], 0 }
   0x4   :  { %17 = vsyncadd [#allocation3], 64  ;;  %s18_s20 = sshll.u32 %s1441_s0, 4  ;;  %s1110_s21 = smov [#allocation2]   ;;  %s19_s20 = int_to_ptr.hbm [resolvable:$true] %s18_s20 }
   0x5   :  { %s20_s22 = sshll.u32 %s1110_s21, 4  ;;  %s1111_s23 = smov 64   ;;  %s21_s22 = int_to_ptr.vmem [resolvable:$true] %s20_s22 }
   0x6   :  { %s1112_s24 = smov 4  }
   0x7   :  { %26 = dma.hbm_to_vmem [thread:$0]  %s19_s20, 64, %s21_s22, [#allocation3], %s1111_s23, %s1111_s23, %s1112_s24  }
   0x8   :  { %30 = vsyncadd [#allocation6], 512  ;;  %s31_s27 = sshll.u32 %s1442_s1, 4  ;;  %s1113_s28 = smov [#allocation5]   ;;  %s32_s27 = int_to_ptr.hbm [resolvable:$true] %s31_s27 }
   0x9   :  { %s33_s29 = sshll.u32 %s1113_s28, 4  ;;  %s1114_s0 = smov 128   ;;  %s34_s29 = int_to_ptr.vmem [resolvable:$true] %s33_s29 }
   0xa   :  { %s1115_s30 = smov 8   ;;  %s57_s8 = sshll.u32 %s1444_s3, 4  ;;  %s58_s8 = int_to_ptr.hbm [resolvable:$true] %s57_s8 }
   0xb   :  { %39 = dma.hbm_to_vmem [thread:$0]  %s32_s27, 512, %s34_s29, [#allocation6], %s1114_s0, %s1114_s0, %s1115_s30  }
   0xc   :  { %43 = vsyncadd [#allocation6], 512  ;;  %s1116_s9 = smov [#allocation8]   ;;  %s44_s1 = sshll.u32 %s1443_s2, 4  ;;  %s45_s1 = int_to_ptr.hbm [resolvable:$true] %s44_s1 }
   0xd   :  { %s59_s10 = sshll.u32 %s1116_s9, 4  ;;  %s1117_s13 = smov [#allocation7]   ;;  %s60_s10 = int_to_ptr.vmem [resolvable:$true] %s59_s10 }
   0xe   :  { %65 = dma.hbm_to_vmem [thread:$0]  %s58_s8, 1024, %s60_s10, [#allocation9], %s1114_s0, %s1114_s0, %s1115_s30  }
   0xf   :  { %s46_s14 = sshll.u32 %s1117_s13, 4  ;;  %s71_s17 = sshll.u32 %s1445_s4, 4  ;;  %s47_s14 = int_to_ptr.vmem [resolvable:$true] %s46_s14  ;;  %s72_s17 = int_to_ptr.hbm [resolvable:$true] %s71_s17 }
  0x10   :  { %52 = dma.hbm_to_vmem [thread:$0]  %s45_s1, 512, %s47_s14, [#allocation6], %s1114_s0, %s1114_s0, %s1115_s30  }
  0x11   :  { %s1118_s3 = smov [#allocation10]  }
  0x12   :  { %s73_s18 = sshll.u32 %s1118_s3, 4  ;;  %s74_s18 = int_to_ptr.vmem [resolvable:$true] %s73_s18 }
  0x13   :  { %76 = dma.hbm_to_vmem [thread:$0]  %s72_s17, 128, %s74_s18, [#allocation9]  }
  0x14   :  { %1102 = dma.done.wait [#allocation3], 128  }
  0x15   :  { %1103 = vsyncadd [#allocation3], 4294967168 }
  0x16   :  { %1104 = dma.done.wait [#allocation6], 2048  }
  0x17   :  { %1105 = vsyncadd [#allocation6], 4294965248 }
  0x18   :  { %1106 = dma.done.wait [#allocation9], 1152  }
  0x19   :  { %1107 = vsyncadd [#allocation9], 4294966144  ;;  %v1170_v0 = vld [vmem:[#allocation2] sm:$0xff]  ;;  %v98_v1 = vld [vmem:[#allocation5] sm:$0xff]  ;;  %vm146_vm0 = vcmask 523264   ;;  %v187_v43 = vlaneseq  ;;  %vm197_vm1 = vcmask 1041409  }
  0x1a   :  { %v122_v2 = vperm.slane %v1170_v0, 0  ;;  %v116_v3 = vrot.slane %v1170_v0, 2  ;;  %v118_v4 = vrot.slane %v1170_v0, 4  ;;  %v115_v5 = vrot.slane %v1170_v0, 1  ;;  %v100_v6 = vld [vmem:[#allocation5 + $0x10] sm:$0xff]  ;;  %v102_v7 = vld [vmem:[#allocation5 + $0x20] sm:$0xff] }
  0x1b   :  { %v117_v8 = vrot.slane %v1170_v0, 3  ;;  %v119_v9 = vrot.slane %v1170_v0, 5  ;;  %v99_v14 = vld [vmem:[#allocation5 + $0x8] sm:$0xff]  ;;  %v101_v15 = vld [vmem:[#allocation5 + $0x18] sm:$0xff]  ;;  %v120_v25 = vrot.slane %v1170_v0, 6  ;;  %v121_v28 = vrot.slane %v1170_v0, 7 }
  0x1c   :  { %v138_v10 = vmul.f32 %v122_v2, %v98_v1  ;;  %v124_v11 = vperm.slane %v116_v3, 0  ;;  %v126_v12 = vperm.slane %v118_v4, 0  ;;  %v123_v13 = vperm.slane %v115_v5, 0  ;;  %v103_v21 = vld [vmem:[#allocation5 + $0x28] sm:$0xff]  ;;  %v104_v31 = vld [vmem:[#allocation5 + $0x30] sm:$0xff]  ;;  %v105_v35 = vld [vmem:[#allocation5 + $0x38] sm:$0xff] }
  0x1d   :  { %v125_v16 = vperm.slane %v117_v8, 0  ;;  %v127_v20 = vperm.slane %v119_v9, 0  ;;  %v128_v30 = vperm.slane %v120_v25, 0  ;;  %v129_v34 = vperm.slane %v121_v28, 0 }
  0x1e   :  { %v147_v17 = vsel %vm146_vm0, %v138_v10, 0.0  ;;  %v140_v18 = vmul.f32 %v124_v11, %v100_v6  ;;  %v142_v19 = vmul.f32 %v126_v12, %v102_v7  ;;  %v139_v24 = vmul.f32 %v123_v13, %v99_v14 }
  0x1f   :  { %148 = vadd.xlane.f32.xlu0 %v147_v17  ;;  %v141_v26 = vmul.f32 %v125_v16, %v101_v15  ;;  %v143_v27 = vmul.f32 %v127_v20, %v103_v21  ;;  %v144_v36 = vmul.f32 %v128_v30, %v104_v31  ;;  %v145_v37 = vmul.f32 %v129_v34, %v105_v35 }
  0x20   :  { %v153_v22 = vsel %vm146_vm0, %v140_v18, 0.0  ;;  %v159_v23 = vsel %vm146_vm0, %v142_v19, 0.0  ;;  %v150_v29 = vsel %vm146_vm0, %v139_v24, 0.0  ;;  %v1202_v44 = vand.u32 127, %v187_v43 }
  0x21   :  { %154 = vadd.xlane.f32.xlu1 %v153_v22  ;;  %160 = vadd.xlane.f32.xlu2 %v159_v23  ;;  %v156_v32 = vsel %vm146_vm0, %v141_v26, 0.0  ;;  %v162_v33 = vsel %vm146_vm0, %v143_v27, 0.0  ;;  %v165_v38 = vsel %vm146_vm0, %v144_v36, 0.0  ;;  %v168_v39 = vsel %vm146_vm0, %v145_v37, 0.0 }
  0x22   :  { %vm199_vm2 = vcmask 1042434   ;;  %vm201_vm3 = vcmask 1043459   ;;  %vm203_vm4 = vcmask 1044484   ;;  %vm205_vm5 = vcmask 1045509  }
  0x23   :  { %vm1448_vm6 = vcmask 1046534   ;;  %vm1447_vm7 = vcmask 1047559   ;;  %vm212_vm8 = vcmask 64512   ;;  %v1119_v16 = vmov 0  }
  0x24   :  { %889 = vset.pattern.permute.xlu2 %v1119_v16  ;;  %888 = vset.pattern.permute.xlu1 %v1119_v16 }
  0x25   :  { %887 = vset.pattern.permute.xlu0 %v1119_v16 }
  0x27   :  { %151 = vadd.xlane.f32.xlu0 %v150_v29 }
  0x29   :  { %157 = vadd.xlane.f32.xlu1 %v156_v32  ;;  %163 = vadd.xlane.f32.xlu2 %v162_v33 }
  0x2f   :  { %166 = vadd.xlane.f32.xlu0 %v165_v38 }
  0x31   :  { %169 = vadd.xlane.f32.xlu1 %v168_v39 }
  0x92   :  { %v149_v40 = vpop.xlane.xlu0 %148 }
  0x93   :  { %v171_v45 = vmul.f32 0.125, %v149_v40 }
  0x94   :  { %v155_v41 = vpop.xlane.xlu1 %154  ;;  %v161_v42 = vpop.xlane.xlu2 %160 }
  0x95   :  { %v173_v46 = vmul.f32 0.125, %v155_v41  ;;  %v189_v51 = vperm.slane %v171_v45, %v1202_v44  ;;  %v175_v52 = vmul.f32 0.125, %v161_v42 }
  0x97   :  { %v191_v55 = vperm.slane %v173_v46, %v1202_v44  ;;  %v193_v60 = vperm.slane %v175_v52, %v1202_v44 }
  0x9a   :  { %v152_v47 = vpop.xlane.xlu0 %151 }
  0x9b   :  { %v172_v48 = vmul.f32 0.125, %v152_v47 }
  0x9c   :  { %v158_v49 = vpop.xlane.xlu1 %157  ;;  %v164_v50 = vpop.xlane.xlu2 %163 }
  0x9d   :  { %v190_v53 = vperm.slane %v172_v48, %v1202_v44  ;;  %v174_v54 = vmul.f32 0.125, %v158_v49  ;;  %v176_v56 = vmul.f32 0.125, %v164_v50 }
  0x9f   :  { %v198_v57 = vsel %vm197_vm1, %v190_v53, %v189_v51  ;;  %v192_v58 = vperm.slane %v174_v54, %v1202_v44  ;;  %v194_v62 = vperm.slane %v176_v56, %v1202_v44 }
  0xa0   :  { %v200_v59 = vsel %vm199_vm2, %v191_v55, %v198_v57 }
  0xa1   :  { %v202_v61 = vsel %vm201_vm3, %v192_v58, %v200_v59 }
  0xa2   :  { %v167_v63 = vpop.xlane.xlu0 %166  ;;  %v204_v2 = vsel %vm203_vm4, %v193_v60, %v202_v61 }
  0xa3   :  { %v177_v1 = vmul.f32 0.125, %v167_v63  ;;  %v206_v11 = vsel %vm205_vm5, %v194_v62, %v204_v2 }
  0xa4   :  { %v170_v6 = vpop.xlane.xlu1 %169 }
  0xa5   :  { %v195_v7 = vperm.slane %v177_v1, %v1202_v44  ;;  %v178_v10 = vmul.f32 0.125, %v170_v6 }
  0xa7   :  { %v196_v12 = vperm.slane %v178_v10, %v1202_v44  ;;  %v208_v13 = vsel %vm1448_vm6, %v195_v7, %v206_v11 }
  0xa9   :  { %v210_v14 = vsel %vm1447_vm7, %v196_v12, %v208_v13 }
  0xaa   :  { %v213_v15 = vsel %vm212_vm8, %v210_v14, -inf }
  0xab   :  { %214 = vmax.xlane.f32.xlu2 %v213_v15 }
 0x11e   :  { %v215_v17 = vpop.xlane.xlu2 %214 }
 0x11f   :  { %v219_v18 = vperm.slane %v215_v17, 2  ;;  %v218_v19 = vperm.slane %v215_v17, 1  ;;  %v217_v20 = vperm.slane %v215_v17, 0  ;;  %v220_v24 = vperm.slane %v215_v17, 3 }
 0x120   :  { %v221_v26 = vperm.slane %v215_v17, 4  ;;  %v224_v27 = vperm.slane %v215_v17, 7  ;;  %v222_v36 = vperm.slane %v215_v17, 5  ;;  %v223_v38 = vperm.slane %v215_v17, 6 }
 0x121   :  { %v235_v21 = vsub.f32 %v173_v46, %v219_v18  ;;  %v234_v22 = vsub.f32 %v172_v48, %v218_v19  ;;  %v233_v23 = vsub.f32 %v171_v45, %v217_v20  ;;  %v236_v32 = vsub.f32 %v174_v54, %v220_v24 }
 0x122   :  { %v237_v33 = vsub.f32 %v175_v52, %v221_v26  ;;  %v240_v34 = vsub.f32 %v178_v10, %v224_v27  ;;  %v238_v43 = vsub.f32 %v176_v56, %v222_v36  ;;  %v239_v45 = vsub.f32 %v177_v1, %v223_v38 }
 0x123   :  { %v245_v29 = vmul.f32 1.442695, %v235_v21  ;;  %v243_v30 = vmul.f32 1.442695, %v234_v22  ;;  %v241_v31 = vmul.f32 1.442695, %v233_v23 }
 0x124   :  { %v247_v35 = vmul.f32 1.442695, %v236_v32  ;;  %v249_v37 = vmul.f32 1.442695, %v237_v33  ;;  %v255_v40 = vmul.f32 1.442695, %v240_v34 }
 0x125   :  { %916 = vpow2.f32 %v245_v29  ;;  %v251_v46 = vmul.f32 1.442695, %v238_v43  ;;  %v253_v47 = vmul.f32 1.442695, %v239_v45 }
 0x126   :  { %918 = vpow2.f32 %v243_v30 }
 0x127   :  { %920 = vpow2.f32 %v241_v31 }
 0x128   :  { %922 = vpow2.f32 %v247_v35 }
 0x129   :  { %924 = vpow2.f32 %v249_v37 }
 0x12a   :  { %926 = vpow2.f32 %v255_v40 }
 0x12b   :  { %v1220_v39 = vpop.eup %916  ;;  %928 = vpow2.f32 %v251_v46 }
 0x12c   :  { %v1222_v41 = vpop.eup %918  ;;  %272 = vperm.xlu2 %889, %v1220_v39   ;;  %930 = vpow2.f32 %v253_v47 }
 0x12d   :  { %v1225_v42 = vpop.eup %920  ;;  %269 = vperm.xlu1 %888, %v1222_v41  }
 0x12e   :  { %266 = vperm.xlu0 %887, %v1225_v42   ;;  %v1229_v48 = vpop.eup %922 }
 0x12f   :  { %v1231_v49 = vpop.eup %924 }
 0x130   :  { %v1234_v50 = vpop.eup %926 }
 0x131   :  { %v1238_v51 = vpop.eup %928 }
 0x132   :  { %v1240_v52 = vpop.eup %930 }
 0x134   :  { %275 = vperm.xlu2 %889, %v1229_v48  }
 0x135   :  { %278 = vperm.xlu1 %888, %v1231_v49  }
 0x136   :  { %287 = vperm.xlu0 %887, %v1234_v50  }
 0x13c   :  { %281 = vperm.xlu2 %889, %v1238_v51  }
 0x13d   :  { %284 = vperm.xlu1 %888, %v1240_v52  }
 0x186   :  { %v273_v53 = vpop.permute.xlu2 %272 }
 0x187   :  { %v291_v61 = vperm.slane %v273_v53, %v1202_v44 }
 0x18e   :  { %v276_v56 = vpop.permute.xlu2 %275 }
 0x18f   :  { %v292_v1 = vperm.slane %v276_v56, %v1202_v44 }
 0x196   :  { %v282_v2 = vpop.permute.xlu2 %281 }
 0x197   :  { %v294_v11 = vperm.slane %v282_v2, %v1202_v44 }
 0x19f   :  { %v270_v54 = vpop.permute.xlu1 %269 }
 0x1a0   :  { %v267_v55 = vpop.permute.xlu0 %266  ;;  %v290_v57 = vperm.slane %v270_v54, %v1202_v44 }
 0x1a1   :  { %v289_v58 = vperm.slane %v267_v55, %v1202_v44 }
 0x1a3   :  { %v297_v59 = vsel %vm197_vm1, %v290_v57, %v289_v58 }
 0x1a4   :  { %v298_v62 = vsel %vm199_vm2, %v291_v61, %v297_v59 }
 0x1a5   :  { %v299_v6 = vsel %vm201_vm3, %v292_v1, %v298_v62 }
 0x1a7   :  { %v279_v60 = vpop.permute.xlu1 %278 }
 0x1a8   :  { %v293_v63 = vperm.slane %v279_v60, %v1202_v44  ;;  %v288_v10 = vpop.permute.xlu0 %287 }
 0x1a9   :  { %v296_v14 = vperm.slane %v288_v10, %v1202_v44 }
 0x1aa   :  { %v300_v7 = vsel %vm203_vm4, %v293_v63, %v299_v6 }
 0x1ab   :  { %v301_v15 = vsel %vm205_vm5, %v294_v11, %v300_v7 }
 0x1af   :  { %v285_v12 = vpop.permute.xlu1 %284 }
 0x1b0   :  { %v295_v13 = vperm.slane %v285_v12, %v1202_v44 }
 0x1b2   :  { %v302_v16 = vsel %vm1448_vm6, %v295_v13, %v301_v15 }
 0x1b3   :  { %v303_v17 = vsel %vm1447_vm7, %v296_v14, %v302_v16 }
 0x1b4   :  { %v305_v18 = vsel %vm212_vm8, %v303_v17, 0.0 }
 0x1b5   :  { %306 = vadd.xlane.f32.xlu2 %v305_v18 }
 0x228   :  { %v307_v19 = vpop.xlane.xlu2 %306 }
 0x229   :  { %v1260_v20 = vperm.slane %v307_v19, 0  ;;  %v310_v21 = vperm.slane %v307_v19, 1  ;;  %v311_v22 = vperm.slane %v307_v19, 2  ;;  %v1262_v23 = vperm.slane %v307_v19, 3 }
 0x22a   :  { %v1264_v24 = vperm.slane %v307_v19, 4  ;;  %v1267_v44 = vperm.slane %v307_v19, 5  ;;  %v1274_v30 = vperm.slane %v307_v19, 7  ;;  %v1278_v34 = vperm.slane %v307_v19, 6 }
 0x22b   :  { %932 = vrcp.f32 %v1260_v20  ;;  %v364_v27 = vand.u32 2147483647, %v311_v22  ;;  %v366_v31 = vand.u32 2147483648, %v311_v22  ;;  %vm360_vm9 = vweird.f32 %v311_v22 }
 0x22c   :  { %934 = vrcp.f32 %v310_v21  ;;  %vm345_vm10 = vweird.f32 %v310_v21  ;;  %v349_v38 = vand.u32 2147483647, %v310_v21  ;;  %v351_v47 = vand.u32 2147483648, %v310_v21 }
 0x22d   :  { %936 = vrcp.f32 %v311_v22  ;;  %vm1284_vm11 = vcmp.eq.f32.partialorder %v364_v27, 8.507059e+37  ;;  %v367_v56 = vor.u32 1.1754944e-38, %v366_v31  ;;  %v381_v10 = vand.u32 2147483648, %v1262_v23 }
 0x22e   :  { %938 = vrcp.f32 %v1262_v23  ;;  %vm1296_vm14 = vcmp.eq.f32.partialorder %v349_v38, 8.507059e+37  ;;  %v352_v2 = vor.u32 1.1754944e-38, %v351_v47  ;;  %v336_v11 = vand.u32 2147483648, %v1260_v20 }
 0x22f   :  { %940 = vrcp.f32 %v1264_v24  ;;  %v334_v27 = vand.u32 2147483647, %v1260_v20  ;;  %v379_v31 = vand.u32 2147483647, %v1262_v23 }
 0x230   :  { %942 = vrcp.f32 %v1267_v44 }
 0x231   :  { %v1272_v26 = vpop.eup %932  ;;  %944 = vrcp.f32 %v1274_v30 }
 0x232   :  { %v935_v29 = vpop.eup %934  ;;  %v326_v32 = vmul.f32 %v1272_v26, %v1260_v20  ;;  %946 = vrcp.f32 %v1278_v34  ;;  %vm331_vm8 = vweird.f32 %v1272_v26 }
 0x233   :  { %v937_v33 = vpop.eup %936  ;;  %v341_v35 = vmul.f32 %v935_v29, %v310_v21  ;;  %vm346_vm12 = vweird.f32 %v935_v29 }
 0x234   :  { %v1280_v36 = vpop.eup %938  ;;  %v356_v37 = vmul.f32 %v937_v33, %v311_v22  ;;  %v327_v40 = vsub.f32 1.0, %v326_v32  ;;  %vm361_vm13 = vweird.f32 %v937_v33  ;;  %vm347_vm15 = vmor %vm345_vm10, %vm346_vm12  ;;  %vm375_vm10 = vweird.f32 %v1262_v23 }
 0x235   :  { %v1282_v43 = vpop.eup %940  ;;  %v342_v46 = vsub.f32 1.0, %v341_v35  ;;  %v371_v53 = vmul.f32 %v1280_v36, %v1262_v23  ;;  %vm362_vm7 = vmor %vm360_vm9, %vm361_vm13  ;;  %vm376_vm6 = vweird.f32 %v1280_v36  ;;  %vm330_vm9 = vweird.f32 %v1260_v20 }
 0x236   :  { %v1290_v54 = vpop.eup %942  ;;  %v357_v55 = vsub.f32 1.0, %v356_v37  ;;  %v328_v59 = vmul.f32 %v1272_v26, %v327_v40  ;;  %v386_v60 = vmul.f32 %v1282_v43, %v1264_v24  ;;  %v337_v20 = vor.u32 1.1754944e-38, %v336_v11 }
 0x237   :  { %v343_v57 = vmul.f32 %v935_v29, %v342_v46  ;;  %v372_v58 = vsub.f32 1.0, %v371_v53  ;;  %v401_v63 = vmul.f32 %v1290_v54, %v1267_v44  ;;  %v1311_v15 = vpop.eup %944  ;;  %v382_v37 = vor.u32 1.1754944e-38, %v381_v10 }
 0x238   :  { %v358_v61 = vmul.f32 %v937_v33, %v357_v55  ;;  %v329_v13 = vadd.f32 %v1272_v26, %v328_v59  ;;  %v387_v14 = vsub.f32 1.0, %v386_v60  ;;  %v1326_v32 = vpop.eup %946  ;;  %v431_v23 = vmul.f32 %v1311_v15, %v1274_v30 }
 0x239   :  { %v344_v1 = vadd.f32 %v935_v29, %v343_v57  ;;  %v373_v6 = vmul.f32 %v1280_v36, %v372_v58  ;;  %v402_v19 = vsub.f32 1.0, %v401_v63  ;;  %vm335_vm12 = vcmp.eq.f32.partialorder %v334_v27, 8.507059e+37 }
 0x23a   :  { %v359_v7 = vadd.f32 %v937_v33, %v358_v61  ;;  %vm380_vm13 = vcmp.eq.f32.partialorder %v379_v31, 8.507059e+37  ;;  %v416_v40 = vmul.f32 %v1326_v32, %v1278_v34  ;;  %v396_v46 = vand.u32 2147483648, %v1264_v24 }
 0x23b   :  { %v348_v12 = vsel %vm347_vm15, %v935_v29, %v344_v1  ;;  %v374_v18 = vadd.f32 %v1280_v36, %v373_v6  ;;  %v403_v35 = vmul.f32 %v1290_v54, %v402_v19  ;;  %v432_v47 = vsub.f32 1.0, %v431_v23 }
 0x23c   :  { %v363_v16 = vsel %vm362_vm7, %v937_v33, %v359_v7  ;;  %v353_v17 = vsel %vm1296_vm14, %v352_v2, %v348_v12  ;;  %vm332_vm7 = vmor %vm330_vm9, %vm331_vm8  ;;  %v388_v33 = vmul.f32 %v1282_v43, %v387_v14  ;;  %vm391_vm14 = vweird.f32 %v1282_v43 }
 0x23d   :  { %v368_v21 = vsel %vm1284_vm11, %v367_v56, %v363_v16  ;;  %v354_v22 = vmul.f32 %v1222_v41, %v353_v17  ;;  %vm377_vm11 = vmor %vm375_vm10, %vm376_vm6  ;;  %v333_v41 = vsel %vm332_vm7, %v1272_v26, %v329_v13  ;;  %vm406_vm6 = vweird.f32 %v1290_v54 }
 0x23e   :  { %v369_v29 = vmul.f32 %v1220_v39, %v368_v21  ;;  %v378_v39 = vsel %vm377_vm11, %v1280_v36, %v374_v18  ;;  %v338_v38 = vsel %vm335_vm12, %v337_v20, %v333_v41  ;;  %v389_v26 = vadd.f32 %v1282_v43, %v388_v33  ;;  %v108_v18 = vld [vmem:[#allocation7 + $0x10] sm:$0xff]  ;;  %v106_v41 = vld [vmem:[#allocation7] sm:$0xff] }
 0x23f   :  { %452 = vperm.xlu1 %888, %v354_v22   ;;  %v383_v45 = vsel %vm380_vm13, %v382_v37, %v378_v39  ;;  %v404_v36 = vadd.f32 %v1290_v54, %v403_v35  ;;  %v417_v53 = vsub.f32 1.0, %v416_v40  ;;  %v339_v55 = vmul.f32 %v1225_v42, %v338_v38  ;;  %v109_v39 = vld [vmem:[#allocation7 + $0x18] sm:$0xff] }
 0x240   :  { %457 = vperm.xlu0 %887, %v369_v29   ;;  %v411_v56 = vand.u32 2147483648, %v1267_v44  ;;  %vm390_vm15 = vweird.f32 %v1264_v24  ;;  %v394_v57 = vand.u32 2147483647, %v1264_v24  ;;  %v384_v58 = vmul.f32 %v1229_v48, %v383_v45 }
 0x241   :  { %vm405_vm8 = vweird.f32 %v1267_v44  ;;  %v409_v59 = vand.u32 2147483647, %v1267_v44  ;;  %vm392_vm9 = vmor %vm390_vm15, %vm391_vm14  ;;  %v418_v42 = vmul.f32 %v1326_v32, %v417_v53  ;;  %v397_v62 = vor.u32 1.1754944e-38, %v396_v46 }
 0x242   :  { %vm407_vm10 = vmor %vm405_vm8, %vm406_vm6  ;;  %v393_v60 = vsel %vm392_vm9, %v1282_v43, %v389_v26  ;;  %v433_v24 = vmul.f32 %v1311_v15, %v432_v47  ;;  %v412_v48 = vor.u32 1.1754944e-38, %v411_v56  ;;  %vm395_vm7 = vcmp.eq.f32.partialorder %v394_v57, 8.507059e+37  ;;  %v110_v47 = vld [vmem:[#allocation7 + $0x20] sm:$0xff]  ;;  %v111_v56 = vld [vmem:[#allocation7 + $0x28] sm:$0xff] }
 0x243   :  { %v408_v61 = vsel %vm407_vm10, %v1290_v54, %v404_v36  ;;  %vm410_vm11 = vcmp.eq.f32.partialorder %v409_v59, 8.507059e+37  ;;  %v398_v63 = vsel %vm395_vm7, %v397_v62, %v393_v60  ;;  %v419_v1 = vadd.f32 %v1326_v32, %v418_v42 }
 0x244   :  { %v413_v44 = vsel %vm410_vm11, %v412_v48, %v408_v61  ;;  %vm421_vm12 = vweird.f32 %v1326_v32  ;;  %v434_v2 = vadd.f32 %v1311_v15, %v433_v24  ;;  %vm436_vm13 = vweird.f32 %v1311_v15 }
 0x245   :  { %v426_v43 = vand.u32 2147483648, %v1278_v34  ;;  %v399_v54 = vmul.f32 %v1231_v49, %v398_v63  ;;  %v441_v6 = vand.u32 2147483648, %v1274_v30  ;;  %vm420_vm6 = vweird.f32 %v1278_v34 }
 0x246   :  { %v424_v7 = vand.u32 2147483647, %v1278_v34  ;;  %v414_v10 = vmul.f32 %v1238_v51, %v413_v44  ;;  %vm435_vm14 = vweird.f32 %v1274_v30  ;;  %v439_v11 = vand.u32 2147483647, %v1274_v30  ;;  %vm422_vm15 = vmor %vm420_vm6, %vm421_vm12  ;;  %v107_v30 = vld [vmem:[#allocation7 + $0x8] sm:$0xff] }
 0x247   :  { %447 = vperm.xlu1 %888, %v339_v55   ;;  %vm437_vm8 = vmor %vm435_vm14, %vm436_vm13  ;;  %v423_v12 = vsel %vm422_vm15, %v1326_v32, %v419_v1  ;;  %v427_v13 = vor.u32 1.1754944e-38, %v426_v43  ;;  %v442_v14 = vor.u32 1.1754944e-38, %v441_v6  ;;  %vm1453_vm7 = vcmask 1046534  }
 0x248   :  { %462 = vperm.xlu0 %887, %v384_v58   ;;  %v438_v49 = vsel %vm437_vm8, %v1311_v15, %v434_v2  ;;  %vm425_vm9 = vcmp.eq.f32.partialorder %v424_v7, 8.507059e+37  ;;  %vm440_vm10 = vcmp.eq.f32.partialorder %v439_v11, 8.507059e+37  ;;  %vm1454_vm11 = vcmask 1047559   ;;  %vm1455_vm13 = vmmov %vm1453_vm7 }
 0x249   :  { %v428_v16 = vsel %vm425_vm9, %v427_v13, %v423_v12  ;;  %v443_v34 = vsel %vm440_vm10, %v442_v14, %v438_v49  ;;  %v113_v13 = vld [vmem:[#allocation7 + $0x38] sm:$0xff] }
 0x24a   :  { %v429_v51 = vmul.f32 %v1240_v52, %v428_v16  ;;  %v444_v17 = vmul.f32 %v1234_v50, %v443_v34 }
 0x24f   :  { %467 = vperm.xlu1 %888, %v399_v54  }
 0x250   :  { %472 = vperm.xlu0 %887, %v414_v10   ;;  %v112_v10 = vld [vmem:[#allocation7 + $0x30] sm:$0xff] }
 0x257   :  { %477 = vperm.xlu1 %888, %v429_v51  }
 0x258   :  { %482 = vperm.xlu0 %887, %v444_v17  }
 0x2b1   :  { %v453_v19 = vpop.permute.xlu1 %452 }
 0x2b2   :  { %v458_v21 = vpop.permute.xlu0 %457  ;;  %v486_v22 = vmul.f32 %v453_v19, %v107_v30 }
 0x2b3   :  { %v487_v27 = vmul.f32 %v458_v21, %v108_v18 }
 0x2b4   :  { %v500_v15 = vsel %vm146_vm0, %v486_v22, 0.0 }
 0x2b5   :  { %v507_v29 = vsel %vm146_vm0, %v487_v27, 0.0  ;;  %v501_v31 = vrot.slane %v500_v15, 4 }
 0x2b6   :  { %v508_v32 = vrot.slane %v507_v29, 4 }
 0x2b7   :  { %v502_v33 = vadd.f32 %v501_v31, %v500_v15 }
 0x2b8   :  { %v509_v35 = vadd.f32 %v508_v32, %v507_v29 }
 0x2b9   :  { %v448_v52 = vpop.permute.xlu1 %447  ;;  %v503_v37 = vrot.slane %v502_v33, 2 }
 0x2ba   :  { %v463_v20 = vpop.permute.xlu0 %462  ;;  %v485_v50 = vmul.f32 %v448_v52, %v106_v41  ;;  %v510_v36 = vrot.slane %v509_v35, 2 }
 0x2bb   :  { %v488_v23 = vmul.f32 %v463_v20, %v109_v39  ;;  %v504_v53 = vadd.f32 %v503_v37, %v502_v33 }
 0x2bc   :  { %v493_v38 = vsel %vm146_vm0, %v485_v50, 0.0  ;;  %v511_v61 = vadd.f32 %v510_v36, %v509_v35 }
 0x2bd   :  { %v514_v40 = vsel %vm146_vm0, %v488_v23, 0.0  ;;  %v494_v45 = vrot.slane %v493_v38, 4  ;;  %v505_v48 = vrot.slane %v504_v53, 1 }
 0x2be   :  { %v515_v26 = vrot.slane %v514_v40, 4  ;;  %v512_v6 = vrot.slane %v511_v61, 1 }
 0x2bf   :  { %v495_v46 = vadd.f32 %v494_v45, %v493_v38  ;;  %v506_v11 = vadd.f32 %v505_v48, %v504_v53 }
 0x2c0   :  { %v516_v55 = vadd.f32 %v515_v26, %v514_v40  ;;  %v513_v18 = vadd.f32 %v512_v6, %v511_v61 }
 0x2c1   :  { %v496_v57 = vrot.slane %v495_v46, 2  ;;  %v468_v58 = vpop.permute.xlu1 %467  ;;  %v1380_v22 = vadd.f32 %v506_v11, %v115_v5 }
 0x2c2   :  { %v517_v59 = vrot.slane %v516_v55, 2  ;;  %v473_v60 = vpop.permute.xlu0 %472  ;;  %v489_v42 = vmul.f32 %v468_v58, %v110_v47  ;;  %v573_v20 = vadd.f32 %v513_v18, %v116_v3 }
 0x2c3   :  { %v497_v62 = vadd.f32 %v496_v57, %v495_v46  ;;  %v490_v24 = vmul.f32 %v473_v60, %v111_v56  ;;  %v587_v5 = vrot.slane %v1380_v22, 7 }
 0x2c4   :  { %v518_v63 = vadd.f32 %v517_v59, %v516_v55  ;;  %v521_v44 = vsel %vm146_vm0, %v489_v42, 0.0  ;;  %v589_v46 = vrot.slane %v573_v20, 6 }
 0x2c5   :  { %v528_v1 = vsel %vm146_vm0, %v490_v24, 0.0  ;;  %v522_v2 = vrot.slane %v521_v44, 4  ;;  %v498_v43 = vrot.slane %v497_v62, 1 }
 0x2c6   :  { %v529_v54 = vrot.slane %v528_v1, 4  ;;  %v519_v12 = vrot.slane %v518_v63, 1 }
 0x2c7   :  { %v523_v7 = vadd.f32 %v522_v2, %v521_v44  ;;  %v499_v34 = vadd.f32 %v498_v43, %v497_v62  ;;  %v1120_v43 = vmov 64.0  }
 0x2c8   :  { %v530_v49 = vadd.f32 %v529_v54, %v528_v1  ;;  %v520_v27 = vadd.f32 %v519_v12, %v518_v63  ;;  %948 = vrcp.f32 %v1120_v43  ;;  %v553_v43 = vld [vmem:[#allocation8 + $0x20] sm:$0xff] }
 0x2c9   :  { %v524_v14 = vrot.slane %v523_v7, 2  ;;  %v478_v16 = vpop.permute.xlu1 %477  ;;  %v571_v33 = vadd.f32 %v499_v34, %v1170_v0 }
 0x2ca   :  { %v531_v51 = vrot.slane %v530_v49, 2  ;;  %v483_v17 = vpop.permute.xlu0 %482  ;;  %v491_v30 = vmul.f32 %v478_v16, %v112_v10  ;;  %v574_v23 = vadd.f32 %v520_v27, %v117_v8 }
 0x2cb   :  { %v525_v19 = vadd.f32 %v524_v14, %v523_v7  ;;  %v492_v21 = vmul.f32 %v483_v17, %v113_v13  ;;  %v588_v26 = vsel %vm197_vm1, %v587_v5, %v571_v33 }
 0x2cc   :  { %v532_v15 = vadd.f32 %v531_v51, %v530_v49  ;;  %v535_v29 = vsel %vm146_vm0, %v491_v30, 0.0  ;;  %v591_v53 = vrot.slane %v574_v23, 5  ;;  %v590_v8 = vsel %vm199_vm2, %v589_v46, %v588_v26 }
 0x2cd   :  { %v526_v31 = vrot.slane %v525_v19, 1  ;;  %v542_v32 = vsel %vm146_vm0, %v492_v21, 0.0  ;;  %v536_v41 = vrot.slane %v535_v29, 4 }
 0x2ce   :  { %v533_v39 = vrot.slane %v532_v15, 1  ;;  %v543_v52 = vrot.slane %v542_v32, 4  ;;  %v949_v54 = vpop.eup %948 }
 0x2cf   :  { %v527_v50 = vadd.f32 %v526_v31, %v525_v19  ;;  %v537_v35 = vadd.f32 %v536_v41, %v535_v29  ;;  %vm610_vm12 = vweird.f32 %v949_v54 }
 0x2d0   :  { %v534_v37 = vadd.f32 %v533_v39, %v532_v15  ;;  %v544_v38 = vadd.f32 %v543_v52, %v542_v32 }
 0x2d1   :  { %v575_v40 = vadd.f32 %v527_v50, %v118_v4  ;;  %v538_v45 = vrot.slane %v537_v35, 2  ;;  %v592_v4 = vsel %vm201_vm3, %v591_v53, %v590_v8 }
 0x2d2   :  { %v545_v36 = vrot.slane %v544_v38, 2  ;;  %v576_v3 = vadd.f32 %v534_v37, %v119_v9 }
 0x2d3   :  { %v539_v47 = vadd.f32 %v538_v45, %v537_v35  ;;  %v593_v56 = vrot.slane %v575_v40, 4 }
 0x2d4   :  { %v546_v55 = vadd.f32 %v545_v36, %v544_v38  ;;  %v595_v42 = vrot.slane %v576_v3, 3 }
 0x2d5   :  { %v540_v57 = vrot.slane %v539_v47, 1  ;;  %v594_v62 = vsel %vm203_vm4, %v593_v56, %v592_v4 }
 0x2d6   :  { %v547_v58 = vrot.slane %v546_v55, 1  ;;  %v596_v48 = vsel %vm205_vm5, %v595_v42, %v594_v62 }
 0x2d7   :  { %v541_v59 = vadd.f32 %v540_v57, %v539_v47 }
 0x2d8   :  { %v548_v60 = vadd.f32 %v547_v58, %v546_v55 }
 0x2d9   :  { %v577_v61 = vadd.f32 %v541_v59, %v120_v25  ;;  %v606_v25 = vmul.f32 64.0, %v949_v54 }
 0x2da   :  { %v578_v24 = vadd.f32 %v548_v60, %v121_v28 }
 0x2db   :  { %v597_v9 = vrot.slane %v577_v61, 2  ;;  %v607_v6 = vsub.f32 1.0, %v606_v25  ;;  %v551_v25 = vld [vmem:[#allocation8 + $0x10] sm:$0xff] }
 0x2dc   :  { %v599_v63 = vrot.slane %v578_v24, 1 }
 0x2dd   :  { %v598_v44 = vsel %vm1453_vm7, %v597_v9, %v596_v48  ;;  %v608_v7 = vmul.f32 %v949_v54, %v607_v6  ;;  %v550_v6 = vld [vmem:[#allocation8 + $0x8] sm:$0xff] }
 0x2de   :  { %v600_v1 = vsel %vm1454_vm11, %v599_v63, %v598_v44  ;;  %v556_v44 = vld [vmem:[#allocation8 + $0x38] sm:$0xff] }
 0x2df   :  { %v602_v2 = vsel %vm146_vm0, %v600_v1, 0.0  ;;  %v609_v10 = vadd.f32 %v949_v54, %v608_v7  ;;  %v555_v1 = vld [vmem:[#allocation8 + $0x30] sm:$0xff]  ;;  %739 = vmatpush.msra.mxu0 %v556_v44 }
 0x2e0   :  { %603 = vadd.xlane.f32.xlu1 %v602_v2  ;;  %v554_v2 = vld [vmem:[#allocation8 + $0x28] sm:$0xff] }
 0x2e1   :  { %v1406_v0 = vsel %vm610_vm12, %v949_v54, %v609_v10  ;;  %740 = vmatpush.msra.mxu0 %v555_v1  ;;  %v552_v54 = vld [vmem:[#allocation8 + $0x18] sm:$0xff]  ;;  %v549_v10 = vld [vmem:[#allocation8] sm:$0xff] }
 0x2e3   :  { %741 = vmatpush.msra.mxu0 %v554_v2 }
 0x2e5   :  { %742 = vmatpush.msra.mxu0 %v553_v43 }
 0x2e7   :  { %743 = vmatpush.msra.mxu0 %v552_v54 }
 0x2e9   :  { %744 = vmatpush.msra.mxu0 %v551_v25 }
 0x2eb   :  { %745 = vmatpush.msra.mxu0 %v550_v6 }
 0x2ed   :  { %746 = vmatpush.msra.mxu0 %v549_v10 }
 0x353   :  { %v604_v28 = vpop.xlane.xlu1 %603 }
 0x354   :  { %v612_v11 = vmul.f32 %v1406_v0, %v604_v28 }
 0x356   :  { %v614_v12 = vrot.slane %v612_v11, 1  ;;  %v615_v49 = vrot.slane %v612_v11, 2  ;;  %v616_v13 = vrot.slane %v612_v11, 3  ;;  %v617_v14 = vrot.slane %v612_v11, 4 }
 0x357   :  { %v618_v16 = vrot.slane %v612_v11, 5  ;;  %v619_v34 = vrot.slane %v612_v11, 6  ;;  %v620_v51 = vrot.slane %v612_v11, 7  ;;  %v629_v17 = vsub.f32 %v571_v33, %v612_v11 }
 0x358   :  { %v630_v30 = vsub.f32 %v1380_v22, %v614_v12  ;;  %v631_v18 = vsub.f32 %v573_v20, %v615_v49  ;;  %v632_v19 = vsub.f32 %v574_v23, %v616_v13  ;;  %v633_v21 = vsub.f32 %v575_v40, %v617_v14 }
 0x359   :  { %v634_v27 = vsub.f32 %v576_v3, %v618_v16  ;;  %v635_v15 = vsub.f32 %v577_v61, %v619_v34  ;;  %v636_v29 = vsub.f32 %v578_v24, %v620_v51  ;;  %v637_v50 = vmul.f32 %v629_v17, %v629_v17 }
 0x35a   :  { %v638_v31 = vmul.f32 %v630_v30, %v630_v30  ;;  %v639_v32 = vmul.f32 %v631_v18, %v631_v18  ;;  %v640_v41 = vmul.f32 %v632_v19, %v632_v19  ;;  %v641_v39 = vmul.f32 %v633_v21, %v633_v21 }
 0x35b   :  { %v681_v52 = vrot.slane %v630_v30, 7  ;;  %v642_v35 = vmul.f32 %v634_v27, %v634_v27  ;;  %v643_v38 = vmul.f32 %v635_v15, %v635_v15  ;;  %v683_v45 = vrot.slane %v631_v18, 6 }
 0x35c   :  { %v653_v5 = vrot.slane %v638_v31, 7  ;;  %v655_v37 = vrot.slane %v639_v32, 6  ;;  %v644_v33 = vmul.f32 %v636_v29, %v636_v29  ;;  %v657_v20 = vrot.slane %v640_v41, 5 }
 0x35d   :  { %v659_v40 = vrot.slane %v641_v39, 4  ;;  %v685_v26 = vrot.slane %v632_v19, 5  ;;  %v682_v36 = vsel %vm197_vm1, %v681_v52, %v629_v17  ;;  %v661_v47 = vrot.slane %v642_v35, 3  ;;  %v910_v39 = vld [vmem:[#allocation10 + $0x2] ss:$0 sm:$0xff] }
 0x35e   :  { %v654_v22 = vsel %vm197_vm1, %v653_v5, %v637_v50  ;;  %v687_v53 = vrot.slane %v633_v21, 4  ;;  %v684_v3 = vsel %vm199_vm2, %v683_v45, %v682_v36  ;;  %v663_v56 = vrot.slane %v643_v38, 2  ;;  %vm1456_vm1 = vmmov %vm1454_vm11  ;;  %v911_v45 = vld [vmem:[#allocation10 + $0x3] ss:$0 sm:$0xff] }
 0x35f   :  { %v656_v23 = vsel %vm199_vm2, %v655_v37, %v654_v22  ;;  %v689_v57 = vrot.slane %v634_v27, 3  ;;  %v686_v8 = vsel %vm201_vm3, %v685_v26, %v684_v3  ;;  %v665_v59 = vrot.slane %v644_v33, 1  ;;  %vm1457_vm2 = vmmov %vm1453_vm7 }
 0x360   :  { %v658_v46 = vsel %vm201_vm3, %v657_v20, %v656_v23  ;;  %v691_v60 = vrot.slane %v635_v15, 2  ;;  %v688_v4 = vsel %vm203_vm4, %v687_v53, %v686_v8  ;;  %v693_v61 = vrot.slane %v636_v29, 1  ;;  %vm1458_vm6 = vmmov %vm1456_vm1 }
 0x361   :  { %v660_v55 = vsel %vm203_vm4, %v659_v40, %v658_v46  ;;  %v690_v62 = vsel %vm205_vm5, %v689_v57, %v688_v4  ;;  %v905_v14 = vpack.i.bf16 %v549_v10, %v550_v6  ;;  %v890_v16 = vpack.i.bf16 %v555_v1, %v556_v44 }
 0x362   :  { %v662_v58 = vsel %vm205_vm5, %v661_v47, %v660_v55  ;;  %v692_v9 = vsel %vm1457_vm2, %v691_v60, %v690_v62  ;;  %v895_v18 = vpack.i.bf16 %v553_v43, %v554_v2  ;;  %v900_v15 = vpack.i.bf16 %v551_v25, %v552_v54 }
 0x363   :  { %v664_v42 = vsel %vm1455_vm13, %v663_v56, %v662_v58  ;;  %v694_v63 = vsel %vm1458_vm6, %v693_v61, %v692_v9  ;;  %906 = vrot.lane.b32.xlu1 %v905_v14, %s1111_s23  ;;  %891 = vrot.lane.b32.xlu2 %v890_v16, %s1111_s23  ;;  %v912_v58 = vld [vmem:[#allocation10] ss:$0 sm:$0xff] }
 0x364   :  { %v666_v24 = vsel %vm1456_vm1, %v665_v59, %v664_v42  ;;  %v696_v37 = vmul.f32 %v910_v39, %v694_v63  ;;  %v913_v42 = vld [vmem:[#allocation10 + $0x1] ss:$0 sm:$0xff] }
 0x365   :  { %v668_v48 = vsel %vm146_vm0, %v666_v24, 0.0 }
 0x366   :  { %669 = vadd.xlane.f32.xlu0 %v668_v48 }
 0x36b   :  { %896 = vrot.lane.b32.xlu2 %v895_v18, %s1111_s23 }
 0x373   :  { %901 = vrot.lane.b32.xlu2 %v900_v15, %s1111_s23 }
 0x3bd   :  { %v892_v23 = vpop.permute.xlu2 %891 }
 0x3be   :  { %v893_v40 = vunpack.i.l.bf16 %v892_v23  ;;  %v894_v26 = vunpack.i.h.bf16 %v892_v23 }
 0x3c0   :  { %796 = vmatpush.msra.mxu1 %v893_v40 }
 0x3c2   :  { %797 = vmatpush.msra.mxu1 %v894_v26 }
 0x3c5   :  { %v897_v36 = vpop.permute.xlu2 %896 }
 0x3c6   :  { %v898_v46 = vunpack.i.l.bf16 %v897_v36  ;;  %v899_v47 = vunpack.i.h.bf16 %v897_v36 }
 0x3c8   :  { %798 = vmatpush.msra.mxu1 %v898_v46 }
 0x3ca   :  { %799 = vmatpush.msra.mxu1 %v899_v47 }
 0x3cd   :  { %v902_v53 = vpop.permute.xlu2 %901 }
 0x3ce   :  { %v903_v3 = vunpack.i.l.bf16 %v902_v53  ;;  %v904_v55 = vunpack.i.h.bf16 %v902_v53 }
 0x3d0   :  { %800 = vmatpush.msra.mxu1 %v903_v3 }
 0x3d2   :  { %801 = vmatpush.msra.mxu1 %v904_v55 }
 0x3d5   :  { %v907_v56 = vpop.permute.xlu1 %906 }
 0x3d6   :  { %v909_v57 = vunpack.i.h.bf16 %v907_v56  ;;  %v908_v8 = vunpack.i.l.bf16 %v907_v56 }
 0x3d8   :  { %802 = vmatpush.msra.mxu1 %v908_v8 }
 0x3d9   :  { %v670_v7 = vpop.xlane.xlu0 %669 }
 0x3da   :  { %v671_v28 = vmul.f32 0.015873017, %v670_v7  ;;  %803 = vmatpush.msra.mxu1 %v909_v57 }
 0x3dc   :  { %950 = vrsqrt.f32 %v671_v28  ;;  %vm704_vm3 = vcmp.eq.f32.partialorder %v671_v28, inf  ;;  %v707_v30 = vand.u32 2147483648, %v671_v28  ;;  %vm706_vm4 = vcmp.eq.f32.partialorder %v671_v28, 0.0 }
 0x3e2   :  { %v951_v11 = vpop.eup %950 }
 0x3e3   :  { %v698_v12 = vmul.f32 %v951_v11, %v671_v28 }
 0x3e5   :  { %v699_v49 = vmul.f32 %v951_v11, %v698_v12 }
 0x3e7   :  { %v700_v13 = vmul.f32 0.5, %v699_v49 }
 0x3e9   :  { %v701_v34 = vsub.f32 1.5, %v700_v13 }
 0x3eb   :  { %v702_v51 = vmul.f32 %v951_v11, %v701_v34 }
 0x3ed   :  { %v703_v17 = vmul.f32 %v702_v51, %v671_v28 }
 0x3ef   :  { %v705_v19 = vsel %vm704_vm3, %v671_v28, %v703_v17 }
 0x3f0   :  { %v708_v21 = vsel %vm706_vm4, %v707_v30, %v705_v19  ;;  %v914_v30 = vld [vmem:[#allocation10 + $0x4] ss:$0 sm:$0xff] }
 0x3f1   :  { %v709_v27 = vadd.f32 1e-06, %v708_v21 }
 0x3f3   :  { %952 = vrcp.f32 %v709_v27  ;;  %v721_v41 = vand.u32 2147483648, %v709_v27  ;;  %v719_v50 = vand.u32 2147483647, %v709_v27  ;;  %vm715_vm14 = vweird.f32 %v709_v27 }
 0x3f5   :  { %v722_v5 = vor.u32 1.1754944e-38, %v721_v41  ;;  %vm720_vm8 = vcmp.eq.f32.partialorder %v719_v50, 8.507059e+37 }
 0x3f9   :  { %v953_v29 = vpop.eup %952 }
 0x3fa   :  { %v711_v31 = vmul.f32 %v953_v29, %v709_v27  ;;  %vm716_vm5 = vweird.f32 %v953_v29 }
 0x3fb   :  { %vm717_vm15 = vmor %vm715_vm14, %vm716_vm5 }
 0x3fc   :  { %v712_v32 = vsub.f32 1.0, %v711_v31 }
 0x3fe   :  { %v713_v52 = vmul.f32 %v953_v29, %v712_v32 }
 0x400   :  { %v714_v35 = vadd.f32 %v953_v29, %v713_v52 }
 0x402   :  { %v718_v38 = vsel %vm717_vm15, %v953_v29, %v714_v35  ;;  %v915_v29 = vld [vmem:[#allocation10 + $0x5] ss:$0 sm:$0xff] }
 0x403   :  { %v723_v33 = vsel %vm720_vm8, %v722_v5, %v718_v38 }
 0x404   :  { %v724_v22 = vmul.f32 %v723_v33, %v696_v37 }
 0x406   :  { %v726_v20 = vadd.f32 %v911_v45, %v724_v22 }
 0x408   :  { %873 = vmatmul.msk.f32.vlgmr.msra.gmra.mxu0 %vm146_vm0, %v726_v20 }
 0x485   :  { %v748_v59 = vpop.f32.mrf.mxu0 }
 0x486   :  { %v749_v60 = vadd.f32 %v912_v58, %v748_v59 }
 0x488   :  { %v751_v4 = vmax.f32 %v749_v60, 0.0 }
 0x48a   :  { %874 = vmatmul.msk.f32.vlgmr.msra.gmra.mxu1 %vm146_vm0, %v751_v4 }
 0x507   :  { %v805_v61 = vpop.f32.mrf.mxu1 }
 0x508   :  { %v806_v62 = vadd.f32 %v913_v42, %v805_v61 }
 0x50a   :  { %v808_v24 = vadd.f32 %v806_v62, %v726_v20 }
 0x50c   :  { %v809_v9 = vsel %vm146_vm0, %v808_v24, 0.0 }
 0x50d   :  { %810 = vadd.xlane.f32.xlu2 %v809_v9 }
 0x580   :  { %v811_v48 = vpop.xlane.xlu2 %810 }
 0x581   :  { %v812_v63 = vmul.f32 %v811_v48, %v1406_v0 }
 0x583   :  { %v813_v44 = vsub.f32 %v808_v24, %v812_v63 }
 0x585   :  { %v814_v1 = vmul.f32 %v813_v44, %v813_v44  ;;  %v820_v15 = vmul.f32 %v914_v30, %v813_v44 }
 0x587   :  { %v815_v2 = vsel %vm146_vm0, %v814_v1, 0.0 }
 0x588   :  { %816 = vadd.xlane.f32.xlu0 %v815_v2 }
 0x5fb   :  { %v817_v43 = vpop.xlane.xlu0 %816 }
 0x5fc   :  { %v818_v54 = vmul.f32 0.015873017, %v817_v43 }
 0x5fe   :  { %954 = vrsqrt.f32 %v818_v54  ;;  %vm828_vm9 = vcmp.eq.f32.partialorder %v818_v54, inf  ;;  %v831_v49 = vand.u32 2147483648, %v818_v54  ;;  %vm830_vm10 = vcmp.eq.f32.partialorder %v818_v54, 0.0 }
 0x604   :  { %v955_v25 = vpop.eup %954 }
 0x605   :  { %v822_v6 = vmul.f32 %v955_v25, %v818_v54 }
 0x607   :  { %v823_v7 = vmul.f32 %v955_v25, %v822_v6 }
 0x609   :  { %v824_v10 = vmul.f32 0.5, %v823_v7 }
 0x60b   :  { %v825_v28 = vsub.f32 1.5, %v824_v10 }
 0x60d   :  { %v826_v11 = vmul.f32 %v955_v25, %v825_v28 }
 0x60f   :  { %v827_v12 = vmul.f32 %v826_v11, %v818_v54 }
 0x611   :  { %v829_v13 = vsel %vm828_vm9, %v818_v54, %v827_v12 }
 0x612   :  { %v832_v0 = vsel %vm830_vm10, %v831_v49, %v829_v13 }
 0x613   :  { %v833_v14 = vadd.f32 1e-06, %v832_v0 }
 0x615   :  { %956 = vrcp.f32 %v833_v14  ;;  %v845_v17 = vand.u32 2147483648, %v833_v14  ;;  %v843_v19 = vand.u32 2147483647, %v833_v14  ;;  %vm839_vm11 = vweird.f32 %v833_v14 }
 0x617   :  { %v846_v27 = vor.u32 1.1754944e-38, %v845_v17  ;;  %vm844_vm13 = vcmp.eq.f32.partialorder %v843_v19, 8.507059e+37 }
 0x61b   :  { %v957_v16 = vpop.eup %956 }
 0x61c   :  { %v835_v34 = vmul.f32 %v957_v16, %v833_v14  ;;  %vm840_vm7 = vweird.f32 %v957_v16 }
 0x61d   :  { %vm841_vm12 = vmor %vm839_vm11, %vm840_vm7 }
 0x61e   :  { %v836_v51 = vsub.f32 1.0, %v835_v34 }
 0x620   :  { %v837_v18 = vmul.f32 %v957_v16, %v836_v51 }
 0x622   :  { %v838_v21 = vadd.f32 %v957_v16, %v837_v18 }
 0x624   :  { %v842_v31 = vsel %vm841_vm12, %v957_v16, %v838_v21 }
 0x625   :  { %v847_v32 = vsel %vm844_vm13, %v846_v27, %v842_v31 }
 0x626   :  { %v848_v41 = vmul.f32 %v847_v32, %v820_v15 }
 0x628   :  { %v850_v39 = vadd.f32 %v915_v29, %v848_v41 }
 0x62a   :  { %851 = vst.msk [vmem:[#allocation11] sm:$0xff] %vm146_vm0, %v850_v39 }
 0x62b   :  { %855 = vsyncadd [#allocation4], 64  ;;  %s858_s19 = sshll.u32 %s1446_s5, 4  ;;  %s1121_s20 = smov [#allocation11]   ;;  %s859_s19 = int_to_ptr.hbm [resolvable:$true] %s858_s19 }
 0x62c   :  { %s856_s21 = sshll.u32 %s1121_s20, 4  ;;  %s857_s21 = int_to_ptr.vmem [resolvable:$true] %s856_s21 }
 0x62d   :  { %864 = dma.vmem_to_hbm [thread:$0]  %s857_s21, 64, %s859_s19, [#allocation4], %s1111_s23, %s1111_s23, %s1112_s24  }
 0x62e   :  { %1108 = dma.done.wait [#allocation4], 128  }
 0x62f   :  { %1109 = vsyncadd [#allocation4], 4294967168 }
 0x630   :  { %869 = vsyncpa [#allocation3], 1 }
 0x631   :  { %870 = vsyncpa [#allocation6], 1 }
 0x632   :  { %871 = vsyncpa [#allocation9], 1 }
 0x633   :  { %872 = vsyncpa [#allocation4], 1 }

</bundles_post_ra>
